<compile_context>
chip_gen: v5e
topology: v5e:2x2
jax: 0.10.0
libtpu: 0.0.40
codegen_flags: <defaults>
</compile_context>

<pallas_src>
import functools

import jax
import jax.numpy as jnp
from jax.experimental import pallas as pl
from jax.experimental.pallas import tpu as pltpu


def _kl_tile_kernel(s_ref, t_ref, o_ref, *, inv_T, batch, tile_rows,
                    mask_rows, fast_log_q):
    s = s_ref[...].astype(jnp.float32) * inv_T
    t = t_ref[...].astype(jnp.float32) * inv_T

    # log_softmax(student / T) over the class (lane) axis.
    s_max = jnp.max(s, axis=-1, keepdims=True)
    s_shift = s - s_max
    s_lse = jnp.log(jnp.sum(jnp.exp(s_shift), axis=-1, keepdims=True))
    log_p = s_shift - s_lse

    # softmax(teacher / T) + 1e-7  (epsilon kept for PyTorch parity).
    t_max = jnp.max(t, axis=-1, keepdims=True)
    t_shift = t - t_max
    t_exp = jnp.exp(t_shift)
    t_sum = jnp.sum(t_exp, axis=-1, keepdims=True)
    # One reciprocal per row instead of a divide per element.
    q = t_exp * pl.reciprocal(t_sum, approx=False) + 1e-7

    if fast_log_q:
        # Reuse the teacher LSE: log(softmax) = shifted - log(sum). Saves one
        # of the three per-element transcendentals (EUP relief), but drops the
        # +1e-7 from inside the log -> flag-gated, not bit-exact vs reference.
        log_q = t_shift - jnp.log(t_sum)
    else:
        log_q = jnp.log(q)

    kl = q * (log_q - log_p)

    if mask_rows:
        # Only emitted for a ragged last tile (B % TB != 0). jnp.where is a
        # true select, so NaN/Inf in the garbage-overhang rows is discarded.
        # Keep this mask BEFORE the axis=0 reduction.
        i = pl.program_id(0)
        rows = i * tile_rows + jax.lax.broadcasted_iota(jnp.int32, kl.shape, 0)
        kl = jnp.where(rows < batch, kl, 0.0)

    # Sublane-first reduce (cheap VPU adds across vregs), then one cross-lane
    # collapse per tile.
    col_sums = jnp.sum(kl, axis=0, keepdims=True)
    tile_sum = jnp.sum(col_sums)

    # Lane-dense, unmasked store of this tile's partial sum.
    o_ref[...] = jnp.full((1, 8, 128), tile_sum, dtype=jnp.float32)


def kl_loss_pallas(student_logits, teacher_logits, temperature: float = 1.0,
                   *, tile_rows=None, fast_log_q=False):
    """KL_Loss.forward(student_logits, teacher_logits) on TPU via Pallas.

    For v5e (HBM-bound at f32) prefer passing bf16 logits; the kernel upcasts
    internally and accumulates in f32.
    """
    assert student_logits.shape == teacher_logits.shape
    B, C = student_logits.shape
    T = float(temperature)

    itemsize = max(jnp.dtype(student_logits.dtype).itemsize,
                   jnp.dtype(teacher_logits.dtype).itemsize)

    # Sublane-packing multiple: 8 rows for f32, 16 for bf16, 32 for int8/fp8,
    # so packed loads stay unmasked.
    row_mult = max(8, 32 // itemsize)

    # Full per-stage VMEM footprint: 2 inputs x 2 double-buffers at the stored
    # dtype + ~6 (TB, C) f32 temporaries (scaled s/t, shifted, exp, q, kl).
    # Budget ~20 MiB -> fits the 32 MiB scoped cap on v5e/v6e/v7x with
    # headroom for the compiler.
    vmem_budget = 20 * 1024 * 1024
    f32_temps = 6
    bytes_per_row = C * (4 * itemsize + f32_temps * 4)
    max_rows_vmem = max(row_mult,
                        (vmem_budget // bytes_per_row) // row_mult * row_mult)

    if tile_rows is not None:
        TB = int(tile_rows)
    elif B <= row_mult:
        TB = B                                   # single block == full batch
    else:
        # Cap at half the batch (rounded up to the packing multiple) so the
        # "parallel" batch grid has >= 2 steps (both v7x TensorCores busy).
        half_b = ((pl.cdiv(B, 2) + row_mult - 1) // row_mult) * row_mult
        TB = max(row_mult, min(max_rows_vmem, half_b, B))

    num_tiles = pl.cdiv(B, TB)
    mask_rows = (B % TB) != 0        # static: skip mask on exact-multiple path

    kernel = functools.partial(
        _kl_tile_kernel, inv_T=1.0 / T, batch=B, tile_rows=TB,
        mask_rows=mask_rows, fast_log_q=fast_log_q)

    n_transcendental = 2 if fast_log_q else 3

    partials = pl.pallas_call(
        kernel,
        grid=(num_tiles,),
        in_specs=[
            pl.BlockSpec((TB, C), lambda i: (i, 0)),
            pl.BlockSpec((TB, C), lambda i: (i, 0)),
        ],
        out_specs=pl.BlockSpec((1, 8, 128), lambda i: (i, 0, 0)),
        out_shape=jax.ShapeDtypeStruct((num_tiles, 8, 128), jnp.float32),
        compiler_params=pltpu.CompilerParams(
            dimension_semantics=("parallel",),
            vmem_limit_bytes=32 * 1024 * 1024,
        ),
        cost_estimate=pl.CostEstimate(
            flops=10 * B * C,
            transcendentals=n_transcendental * B * C,
            bytes_accessed=2 * B * C * itemsize + num_tiles * 8 * 128 * 4,
        ),
    )(student_logits, teacher_logits)

    # Tiny epilogue: sum per-tile partials, apply T*T / B ('batchmean').
    return jnp.sum(partials[:, 0, 0]) * (T * T / B)


def kl_loss_ref(student_logits, teacher_logits, temperature: float = 1.0):
    """Pure-JAX reference mirroring the PyTorch module."""
    T = float(temperature)
    log_p = jax.nn.log_softmax(student_logits.astype(jnp.float32) / T, axis=1)
    q = jax.nn.softmax(teacher_logits.astype(jnp.float32) / T, axis=1) + 1e-7
    B = student_logits.shape[0]
    return T * T * jnp.sum(q * (jnp.log(q) - log_p)) / B


if __name__ == "__main__":
    key = jax.random.PRNGKey(0)
    k1, k2, k3, k4, k5, k6 = jax.random.split(key, 6)

    # Small primary case (matches the module's (batch, num_classes) logits).
    B, C = 8, 32
    student = jax.random.normal(k1, (B, C), dtype=jnp.float32)
    teacher = jax.random.normal(k2, (B, C), dtype=jnp.float32)
    loss = jax.block_until_ready(kl_loss_pallas(student, teacher, 1.0))
    ref = kl_loss_ref(student, teacher, 1.0)
    assert jnp.allclose(loss, ref, atol=1e-5, rtol=1e-5), (loss, ref)

    # Multi-tile case with a ragged last tile (tiling + static row-mask path,
    # megacore split: cdiv(20, 16) = 2 grid steps).
    B2, C2 = 20, 160
    student2 = jax.random.normal(k3, (B2, C2), dtype=jnp.float32)
    teacher2 = jax.random.normal(k4, (B2, C2), dtype=jnp.float32)
    loss2 = jax.block_until_ready(kl_loss_pallas(student2, teacher2, 2.0))
    ref2 = kl_loss_ref(student2, teacher2, 2.0)
    assert jnp.allclose(loss2, ref2, atol=1e-5, rtol=1e-5), (loss2, ref2)

    # bf16 inputs (16-row packing multiple, 2 even tiles, no mask) and the
    # flag-gated fast log(q) path (2 transcendentals/element) at a slightly
    # looser tolerance.
    B3, C3 = 32, 128
    student3 = jax.random.normal(k5, (B3, C3), dtype=jnp.float32).astype(jnp.bfloat16)
    teacher3 = jax.random.normal(k6, (B3, C3), dtype=jnp.float32).astype(jnp.bfloat16)
    loss3 = jax.block_until_ready(
        kl_loss_pallas(student3, teacher3, 1.0, fast_log_q=True))
    ref3 = kl_loss_ref(student3, teacher3, 1.0)
    assert jnp.allclose(loss3, ref3, atol=1e-3, rtol=1e-3), (loss3, ref3)

    print("KERNEL_OK")
</pallas_src>

<mosaic_0001>
module attributes {stable_mosaic.version = 11 : i64} {
  func.func @_kl_tile_kernel(%arg0: i32, %arg1: memref<8x32xf32, #tpu.memory_space<vmem>>, %arg2: memref<8x32xf32, #tpu.memory_space<vmem>>, %arg3: memref<1x8x128xf32, #tpu.memory_space<vmem>>) attributes {dimension_semantics = [#tpu.dimension_semantics<parallel>], iteration_bounds = array<i64: 1>, scalar_prefetch = 0 : i64, scratch_operands = 0 : i64, tpu.core_type = #tpu.core_type<tc>, window_params = [{transform_indices = @transform_0, window_bounds = array<i64: 8, 32>}, {transform_indices = @transform_1, window_bounds = array<i64: 8, 32>}, {transform_indices = @transform_2, window_bounds = array<i64: 1, 8, 128>}]} {
    %c0 = arith.constant 0 : index
    %c0_0 = arith.constant 0 : index
    %0 = vector.load %arg1[%c0, %c0_0] : memref<8x32xf32, #tpu.memory_space<vmem>>, vector<8x32xf32>
    %cst = arith.constant 1.000000e+00 : f32
    %1 = vector.broadcast %cst : f32 to vector<8x32xf32>
    %2 = arith.mulf %0, %1 : vector<8x32xf32>
    %c0_1 = arith.constant 0 : index
    %c0_2 = arith.constant 0 : index
    %3 = vector.load %arg2[%c0_1, %c0_2] : memref<8x32xf32, #tpu.memory_space<vmem>>, vector<8x32xf32>
    %cst_3 = arith.constant 1.000000e+00 : f32
    %4 = vector.broadcast %cst_3 : f32 to vector<8x32xf32>
    %5 = arith.mulf %3, %4 : vector<8x32xf32>
    %cst_4 = arith.constant dense<0xFF800000> : vector<8xf32>
    %6 = vector.multi_reduction <maximumf>, %2, %cst_4 [1] : vector<8x32xf32> to vector<8xf32>
    %7 = vector.shape_cast %6 : vector<8xf32> to vector<8x1xf32>
    %8 = vector.broadcast %7 : vector<8x1xf32> to vector<8x32xf32>
    %9 = arith.subf %2, %8 : vector<8x32xf32>
    %10 = math.exp %9 : vector<8x32xf32>
    %cst_5 = arith.constant dense<0.000000e+00> : vector<8xf32>
    %11 = vector.multi_reduction <add>, %10, %cst_5 [1] : vector<8x32xf32> to vector<8xf32>
    %12 = vector.shape_cast %11 : vector<8xf32> to vector<8x1xf32>
    %13 = math.log %12 : vector<8x1xf32>
    %14 = vector.broadcast %13 : vector<8x1xf32> to vector<8x32xf32>
    %15 = arith.subf %9, %14 : vector<8x32xf32>
    %cst_6 = arith.constant dense<0xFF800000> : vector<8xf32>
    %16 = vector.multi_reduction <maximumf>, %5, %cst_6 [1] : vector<8x32xf32> to vector<8xf32>
    %17 = vector.shape_cast %16 : vector<8xf32> to vector<8x1xf32>
    %18 = vector.broadcast %17 : vector<8x1xf32> to vector<8x32xf32>
    %19 = arith.subf %5, %18 : vector<8x32xf32>
    %20 = math.exp %19 : vector<8x32xf32>
    %cst_7 = arith.constant dense<0.000000e+00> : vector<8xf32>
    %21 = vector.multi_reduction <add>, %20, %cst_7 [1] : vector<8x32xf32> to vector<8xf32>
    %22 = vector.shape_cast %21 : vector<8xf32> to vector<8x1xf32>
    %23 = tpu.reciprocal %22 : vector<8x1xf32> -> vector<8x1xf32>
    %24 = vector.broadcast %23 : vector<8x1xf32> to vector<8x32xf32>
    %25 = arith.mulf %20, %24 : vector<8x32xf32>
    %cst_8 = arith.constant 1.000000e-07 : f32
    %26 = vector.broadcast %cst_8 : f32 to vector<8x32xf32>
    %27 = arith.addf %25, %26 : vector<8x32xf32>
    %28 = math.log %27 : vector<8x32xf32>
    %29 = arith.subf %28, %15 : vector<8x32xf32>
    %30 = arith.mulf %27, %29 : vector<8x32xf32>
    %cst_9 = arith.constant dense<0.000000e+00> : vector<32xf32>
    %31 = vector.multi_reduction <add>, %30, %cst_9 [0] : vector<8x32xf32> to vector<32xf32>
    %32 = vector.shape_cast %31 : vector<32xf32> to vector<1x32xf32>
    %33 = vector.shape_cast %32 : vector<1x32xf32> to vector<1x1x32xf32>
    %cst_10 = arith.constant dense<0.000000e+00> : vector<1xf32>
    %34 = vector.multi_reduction <add>, %33, %cst_10 [1, 2] : vector<1x1x32xf32> to vector<1xf32>
    %35 = vector.shape_cast %34 : vector<1xf32> to vector<1x1x1xf32>
    %36 = vector.extract %35[0, 0, 0] : f32 from vector<1x1x1xf32>
    %37 = vector.broadcast %36 : f32 to vector<1x8x128xf32>
    %c0_11 = arith.constant 0 : index
    %c0_12 = arith.constant 0 : index
    %c0_13 = arith.constant 0 : index
    %38 = vector.load %arg3[%c0_11, %c0_12, %c0_13] : memref<1x8x128xf32, #tpu.memory_space<vmem>>, vector<1x8x128xf32>
    tpu.vector_store %arg3[%c0_11, %c0_12, %c0_13], %37 {strides = array<i32>} : memref<1x8x128xf32, #tpu.memory_space<vmem>>, vector<1x8x128xf32>,
    return
  }
  func.func @transform_0(%arg0: i32) -> (i32, i32) {
    %c0_i32 = arith.constant 0 : i32
    %c0_i32_0 = arith.constant 0 : i32
    return %arg0, %c0_i32 : i32, i32
  }
  func.func @transform_1(%arg0: i32) -> (i32, i32) {
    %c0_i32 = arith.constant 0 : i32
    %c0_i32_0 = arith.constant 0 : i32
    return %arg0, %c0_i32 : i32, i32
  }
  func.func @transform_2(%arg0: i32) -> (i32, i32, i32) {
    %c0_i32 = arith.constant 0 : i32
    %c0_i32_0 = arith.constant 0 : i32
    %c0_i32_1 = arith.constant 0 : i32
    return %arg0, %c0_i32, %c0_i32_0 : i32, i32, i32
  }
}

</mosaic_0001>

<bundles_post_ra>
// kernel: tpu_custom_call.1
= control target key start
LH: loop header
LB: loop body
LE: loop exit
PB: predicated region body
PF: predicated region fallthrough
CT: control target
= control target key end

     0   :  { %7 = vsyncpa [#allocation3], 0  ;;  %s247_s0 = inlined_call_operand.hbm [shape: f32[8,32], index: 0, kind: input, shape index: {}]   ;;  %s248_s1 = inlined_call_operand.hbm [shape: f32[8,32], index: 1, kind: input, shape index: {}]   ;;  %s249_s2 = inlined_call_operand.hbm [shape: f32[1,8,128], index: 2, kind: output, shape index: {}]  }
   0x1   :  { %8 = vsyncpa [#allocation6], 0 }
   0x2   :  { %9 = vsyncpa [#allocation4], 0  ;;  %s15_s11 = sshll.u32 %s247_s0, 4  ;;  %s215_s12 = smov [#allocation2]   ;;  %s16_s11 = int_to_ptr.hbm [resolvable:$true] %s15_s11 }
   0x3   :  { %s17_s13 = sshll.u32 %s215_s12, 4  ;;  %s26_s16 = sshll.u32 %s248_s1, 4  ;;  %s18_s13 = int_to_ptr.vmem [resolvable:$true] %s17_s13  ;;  %s27_s16 = int_to_ptr.hbm [resolvable:$true] %s26_s16 }
   0x4   :  { %20 = dma.hbm_to_vmem [thread:$0]  %s16_s11, 128, %s18_s13, [#allocation3]  }
   0x5   :  { %s216_s17 = smov [#allocation5]  }
   0x6   :  { %s28_s18 = sshll.u32 %s216_s17, 4  ;;  %s29_s18 = int_to_ptr.vmem [resolvable:$true] %s28_s18 }
   0x7   :  { %31 = dma.hbm_to_vmem [thread:$0]  %s27_s16, 128, %s29_s18, [#allocation6]  }
   0x8   :  { %209 = dma.done.wait [#allocation3], 128  }
   0x9   :  { %210 = vsyncadd [#allocation3], 4294967168 }
   0xa   :  { %211 = dma.done.wait [#allocation6], 128  }
   0xb   :  { %212 = vsyncadd [#allocation6], 4294967168  ;;  %vm42_vm0 = vcmask 261120   ;;  %v41_v0 = vld [vmem:[#allocation5] sm:$0xff]  ;;  %v40_v2 = vld [vmem:[#allocation2] sm:$0xff]  ;;  %vm91_vm5 = vcmask 253952  }
   0xc   :  { %v55_v1 = vsel %vm42_vm0, %v41_v0, -inf  ;;  %v43_v3 = vsel %vm42_vm0, %v40_v2, -inf  ;;  %s217_s0 = smov [#allocation7]   ;;  %s111_s21 = sshll.u32 %s249_s2, 4  ;;  %s112_s21 = int_to_ptr.hbm [resolvable:$true] %s111_s21 }
   0xd   :  { %56 = vmax.xlane.f32.xlu0 %v55_v1  ;;  %s109_s1 = sshll.u32 %s217_s0, 4  ;;  %s110_s1 = int_to_ptr.vmem [resolvable:$true] %s109_s1 }
  0x15   :  { %44 = vmax.xlane.f32.xlu0 %v43_v3 }
  0x80   :  { %v57_v4 = vpop.xlane.xlu0 %56 }
  0x81   :  { %v58_v5 = vsub.f32 %v41_v0, %v57_v4 }
  0x83   :  { %v59_v6 = vmul.f32 1.442695, %v58_v5 }
  0x85   :  { %127 = vpow2.f32 %v59_v6 }
  0x88   :  { %v45_v7 = vpop.xlane.xlu0 %44 }
  0x89   :  { %v46_v8 = vsub.f32 %v40_v2, %v45_v7 }
  0x8b   :  { %v128_v9 = vpop.eup %127  ;;  %v47_v10 = vmul.f32 1.442695, %v46_v8 }
  0x8c   :  { %v61_v11 = vsel %vm42_vm0, %v128_v9, 0.0 }
  0x8d   :  { %129 = vpow2.f32 %v47_v10  ;;  %62 = vadd.xlane.f32.xlu1 %v61_v11 }
  0x93   :  { %v130_v12 = vpop.eup %129 }
  0x94   :  { %v49_v13 = vsel %vm42_vm0, %v130_v12, 0.0 }
  0x95   :  { %50 = vadd.xlane.f32.xlu1 %v49_v13 }
 0x100   :  { %v63_v14 = vpop.xlane.xlu1 %62 }
 0x101   :  { %131 = vrcp.f32 %v63_v14  ;;  %v75_v18 = vand.u32 2147483648, %v63_v14  ;;  %v73_v20 = vand.u32 2147483647, %v63_v14  ;;  %vm69_vm2 = vweird.f32 %v63_v14 }
 0x103   :  { %v76_v23 = vor.u32 1.1754944e-38, %v75_v18  ;;  %vm74_vm4 = vcmp.eq.f32.partialorder %v73_v20, 8.507059e+37 }
 0x107   :  { %v132_v15 = vpop.eup %131 }
 0x108   :  { %v65_v16 = vmul.f32 %v132_v15, %v63_v14  ;;  %vm70_vm1 = vweird.f32 %v132_v15  ;;  %v51_v21 = vpop.xlane.xlu1 %50 }
 0x109   :  { %vm71_vm3 = vmor %vm69_vm2, %vm70_vm1  ;;  %133 = vlog2.f32 %v51_v21 }
 0x10a   :  { %v66_v17 = vsub.f32 1.0, %v65_v16 }
 0x10c   :  { %v67_v19 = vmul.f32 %v132_v15, %v66_v17 }
 0x10e   :  { %v68_v22 = vadd.f32 %v132_v15, %v67_v19 }
 0x10f   :  { %v134_v28 = vpop.eup %133 }
 0x110   :  { %v72_v24 = vsel %vm71_vm3, %v132_v15, %v68_v22  ;;  %v53_v29 = vmul.f32 0.6931472, %v134_v28 }
 0x111   :  { %v77_v25 = vsel %vm74_vm4, %v76_v23, %v72_v24 }
 0x112   :  { %v78_v26 = vmul.f32 %v128_v9, %v77_v25  ;;  %v54_v32 = vsub.f32 %v46_v8, %v53_v29 }
 0x114   :  { %v79_v27 = vadd.f32 1e-07, %v78_v26 }
 0x116   :  { %135 = vlog2.f32 %v79_v27 }
 0x11c   :  { %v136_v30 = vpop.eup %135 }
 0x11d   :  { %v81_v31 = vmul.f32 0.6931472, %v136_v30 }
 0x11f   :  { %v82_v33 = vsub.f32 %v81_v31, %v54_v32 }
 0x121   :  { %v83_v34 = vmul.f32 %v82_v33, %v79_v27 }
 0x123   :  { %v84_v35 = vsel %vm42_vm0, %v83_v34, 0.0 }
 0x124   :  { %v85_v36 = vrot.slane %v84_v35, 4 }
 0x126   :  { %v86_v37 = vadd.f32 %v85_v36, %v84_v35 }
 0x128   :  { %v87_v38 = vrot.slane %v86_v37, 2 }
 0x12a   :  { %v88_v39 = vadd.f32 %v87_v38, %v86_v37 }
 0x12c   :  { %v89_v40 = vrot.slane %v88_v39, 1 }
 0x12e   :  { %v90_v41 = vadd.f32 %v89_v40, %v88_v39 }
 0x130   :  { %v92_v42 = vsel %vm91_vm5, %v90_v41, 0.0 }
 0x131   :  { %93 = vadd.xlane.f32.xlu2 %v92_v42 }
 0x1a4   :  { %v94_v43 = vpop.xlane.xlu2 %93 }
 0x1a5   :  { %v95_v44 = vrot.slane %v94_v43, 4 }
 0x1a7   :  { %v96_v45 = vadd.f32 %v95_v44, %v94_v43 }
 0x1a9   :  { %v97_v46 = vrot.slane %v96_v45, 2 }
 0x1ab   :  { %v98_v47 = vadd.f32 %v97_v46, %v96_v45 }
 0x1ad   :  { %v99_v48 = vrot.slane %v98_v47, 1 }
 0x1af   :  { %v100_v49 = vadd.f32 %v99_v48, %v98_v47 }
 0x1b1   :  { %122 = vpush %v100_v49 }
 0x1e2   :  { %s123_s22 = spop %122 }
 0x1e3   :  { %v102_v50 = vstv %s123_s22 }
 0x1e4   :  { %103 = vst [vmem:[#allocation7] sm:$0xff] %v102_v50 }
 0x1e5   :  { %114 = dma.vmem_to_hbm [thread:$0]  %s110_s1, 128, %s112_s21, [#allocation4]  }
 0x1e6   :  { %213 = dma.done.wait [#allocation4], 128  }
 0x1e7   :  { %214 = vsyncadd [#allocation4], 4294967168 }
 0x1e8   :  { %119 = vsyncpa [#allocation3], 1 }
 0x1e9   :  { %120 = vsyncpa [#allocation6], 1 }
 0x1ea   :  { %121 = vsyncpa [#allocation4], 1 }

</bundles_post_ra>
